<compile_context>
chip_gen: v7x
topology: tpu7x:2x2x1
jax: 0.10.0
libtpu: 0.0.40
codegen_flags: <defaults>
</compile_context>

<pallas_src>
import functools

import jax
import jax.numpy as jnp
from jax.experimental import pallas as pl
from jax.experimental.pallas import tpu as pltpu

LANE = 128              # pad feature dims and node counts to this
BLOCK_M = 512           # destination-row tile (sweep 256-1024)
BLOCK_K = 512           # contraction tile (multiple of 256 for v6e/v7x MXU fill)
NEG_SLOPE = 0.01        # PyTorch F.leaky_relu default
# Real double-buffered footprint at 512x512 bf16 tiles is < 2 MiB; 32 MiB
# leaves headroom for compiler scratch and fits every generation (v7x 64 MiB).
VMEM_LIMIT_BYTES = 32 * 1024 * 1024

# Fixed demo schema (same heterogeneous graph the module is used with).
CANONICAL_ETYPES = [
    ("user",   "follows",     "target"),
    ("target", "rev_follows", "user"),
    ("target", "buys",        "item"),
    ("item",   "rev_buys",    "target"),
]


def _round_up(x, m):
    return ((x + m - 1) // m) * m


def _pad2d(x, rows, cols):
    return jnp.pad(x, ((0, rows - x.shape[0]), (0, cols - x.shape[1])))


def _pick_tile(padded_dim, block):
    """Largest multiple of LANE that divides `padded_dim` and is <= block."""
    t = max(LANE, (min(block, padded_dim) // LANE) * LANE)
    while padded_dim % t:
        t -= LANE
    return t


def _row_tile(padded_dim, block):
    """Like _pick_tile, but keep >=2 row tiles when possible so both v7x
    TensorCores get work along the 'parallel' row axis."""
    t = _pick_tile(padded_dim, block)
    if padded_dim // t < 2 and padded_dim >= 2 * LANE:
        t = _pick_tile(padded_dim, padded_dim // 2)
    return t


# ----------------------------------------------------------------------------
# Message transform kernels:  Wh = X @ W + b   (bf16 operands, f32 MXU acc)
# The leaky_relu on layer inputs is fused into the PREVIOUS layer's
# aggregation epilogue, so X arrives already activated and already bf16.
# ----------------------------------------------------------------------------
def _linear_kernel(x_ref, w_ref, b_ref, o_ref):
    wh = jnp.dot(x_ref[...], w_ref[...],
                 preferred_element_type=jnp.float32) + b_ref[...]
    o_ref[...] = wh.astype(o_ref.dtype)


def linear_apply(x, w, b, *, block_rows=BLOCK_M):
    """x: (N, F) bf16, w: (F, H) bf16, b: (1, H) f32 -> (N, H) bf16.

    Used for the target-source transform with W = [W_rev_follows | W_buys]
    (wide-N = 2H matmul: one X read serves both edge types)."""
    n, f = x.shape
    h = w.shape[1]
    bm = _pick_tile(n, block_rows)
    return pl.pallas_call(
        _linear_kernel,
        out_shape=jax.ShapeDtypeStruct((n, h), jnp.bfloat16),
        grid_spec=pltpu.PrefetchScalarGridSpec(
            num_scalar_prefetch=0,
            grid=(n // bm,),
            in_specs=[pl.BlockSpec((bm, f), lambda i: (i, 0)),
                      pl.BlockSpec((f, h), lambda i: (0, 0)),
                      pl.BlockSpec((1, h), lambda i: (0, 0))],
            out_specs=pl.BlockSpec((bm, h), lambda i: (i, 0))),
        compiler_params=pltpu.CompilerParams(
            dimension_semantics=("parallel",),
            vmem_limit_bytes=VMEM_LIMIT_BYTES),
    )(x, w, b)


def _linear_stacked_kernel(x_ref, w_ref, b_ref, o_ref):
    wh = jnp.dot(x_ref[0], w_ref[0],
                 preferred_element_type=jnp.float32) + b_ref[0]
    o_ref[...] = wh.astype(o_ref.dtype)


def linear_stacked_apply(x, w, b, *, block_rows=BLOCK_M):
    """Stacked per-edge-type transform writing straight into one Wh slab.

    x: (E, N, F) bf16, w: (E, F, H) bf16, b: (E, 1, H) f32 -> (E*N, H) bf16.
    Segment e occupies rows [e*N, (e+1)*N) of the output, so the destination's
    concatenated-K aggregation streams it directly: no per-layer
    jnp.concatenate and no extra HBM round trip of Wh."""
    e, n, f = x.shape
    h = w.shape[2]
    bm = _pick_tile(n, block_rows)
    nblk = n // bm
    return pl.pallas_call(
        _linear_stacked_kernel,
        out_shape=jax.ShapeDtypeStruct((e * n, h), jnp.bfloat16),
        grid_spec=pltpu.PrefetchScalarGridSpec(
            num_scalar_prefetch=0,
            grid=(e, nblk),
            in_specs=[pl.BlockSpec((1, bm, f), lambda ei, i: (ei, i, 0)),
                      pl.BlockSpec((1, f, h), lambda ei, i: (ei, 0, 0)),
                      pl.BlockSpec((1, 1, h), lambda ei, i: (ei, 0, 0))],
            out_specs=pl.BlockSpec((bm, h), lambda ei, i: (ei * nblk + i, 0))),
        compiler_params=pltpu.CompilerParams(
            dimension_semantics=("parallel", "parallel"),
            vmem_limit_bytes=VMEM_LIMIT_BYTES),
    )(x, w, b)


# ----------------------------------------------------------------------------
# Aggregation kernels:  out[rows] = epilogue( A[rows, :] @ Wh )
# The output block index is constant along the 'arbitrary' K axis, so the
# accumulator stays VMEM-resident until the last step writes the epilogue.
# K must remain the innermost grid axis.
# ----------------------------------------------------------------------------
def _agg_kernel(a_ref, wh_ref, o_ref, acc_ref, *, negative_slope):
    k = pl.program_id(1)

    @pl.when(k == 0)
    def _():
        acc_ref[...] = jnp.zeros_like(acc_ref)

    acc_ref[...] += jnp.dot(a_ref[...], wh_ref[...],
                            preferred_element_type=jnp.float32)

    @pl.when(k == pl.num_programs(1) - 1)
    def _():
        acc = acc_ref[...]
        # Fused next-layer activation + bf16 cast: halves hidden-state
        # writeback and the next layer's X read.
        o_ref[...] = jnp.where(acc > 0, acc,
                               negative_slope * acc).astype(o_ref.dtype)


def _agg_clf_kernel(a_ref, wh_ref, wc_ref, bc_ref, o_ref, acc_ref):
    """Last-layer 'target' aggregation with the classifier fused into the
    final reduction step (bf16 operands for the tiny classifier matmul)."""
    k = pl.program_id(1)

    @pl.when(k == 0)
    def _():
        acc_ref[...] = jnp.zeros_like(acc_ref)

    acc_ref[...] += jnp.dot(a_ref[...], wh_ref[...],
                            preferred_element_type=jnp.float32)

    @pl.when(k == pl.num_programs(1) - 1)
    def _():
        o_ref[...] = (jnp.dot(acc_ref[...].astype(jnp.bfloat16), wc_ref[...],
                              preferred_element_type=jnp.float32) + bc_ref[...])


def agg_target(a, wh, *, clf=None, block_m=BLOCK_M, block_k=BLOCK_K):
    """a: (Nd, K) bf16, wh: (K, H) bf16.  clf = (Wc (H,O) bf16, bc (1,O) f32)."""
    nd, kk = a.shape
    h = wh.shape[1]
    tm = _row_tile(nd, block_m)
    tk = _pick_tile(kk, block_k)
    grid = (nd // tm, kk // tk)
    in_specs = [
        # TODO(synk): if xprof still shows exposed DMA on A with the larger
        # tiles, try pipeline_mode=pl.Buffered(3) on this spec.
        pl.BlockSpec((tm, tk), lambda i, k: (i, k)),
        pl.BlockSpec((tk, h), lambda i, k: (k, 0)),
    ]
    if clf is None:
        kernel = functools.partial(_agg_kernel, negative_slope=NEG_SLOPE)
        out_shape = jax.ShapeDtypeStruct((nd, h), jnp.bfloat16)
        out_specs = pl.BlockSpec((tm, h), lambda i, k: (i, 0))
        extra = ()
    else:
        wc, bc = clf
        o = wc.shape[1]
        kernel = _agg_clf_kernel
        out_shape = jax.ShapeDtypeStruct((nd, o), jnp.float32)
        out_specs = pl.BlockSpec((tm, o), lambda i, k: (i, 0))
        in_specs += [pl.BlockSpec((h, o), lambda i, k: (0, 0)),
                     pl.BlockSpec((1, o), lambda i, k: (0, 0))]
        extra = (wc, bc)
    return pl.pallas_call(
        kernel,
        out_shape=out_shape,
        grid_spec=pltpu.PrefetchScalarGridSpec(
            num_scalar_prefetch=0,
            grid=grid,
            in_specs=in_specs,
            out_specs=out_specs,
            scratch_shapes=[pltpu.VMEM((tm, h), jnp.float32)]),
        compiler_params=pltpu.CompilerParams(
            dimension_semantics=("parallel", "arbitrary"),
            vmem_limit_bytes=VMEM_LIMIT_BYTES),
    )(a, wh, *extra)


def _agg_ui_kernel(a_ref, wh_ref, o_ref, acc_ref, *, negative_slope):
    k = pl.program_id(2)

    @pl.when(k == 0)
    def _():
        acc_ref[...] = jnp.zeros_like(acc_ref)

    acc_ref[...] += jnp.dot(a_ref[0], wh_ref[...],
                            preferred_element_type=jnp.float32)

    @pl.when(k == pl.num_programs(2) - 1)
    def _():
        acc = acc_ref[...]
        o_ref[0] = jnp.where(acc > 0, acc,
                             negative_slope * acc).astype(o_ref.dtype)


def agg_ui(a_stack, wh_t, *, block_m=BLOCK_M, block_k=BLOCK_K):
    """Stacked user/item aggregation.

    a_stack: (2, N_ui, Nt) bf16 -- [A_rev_follows ; A_buys] padded to a common
    row count.  wh_t: (Nt, 2H) bf16 -- wide-N transform of the target
    features; column block e selects the Wh of edge type e.  The leading grid
    axis of size 2 is 'parallel', so both v7x TensorCores get work even when
    the per-type row count fits one tile."""
    e, nd, kk = a_stack.shape
    h = wh_t.shape[1] // e
    tm = _pick_tile(nd, block_m)
    tk = _pick_tile(kk, block_k)
    grid = (e, nd // tm, kk // tk)
    return pl.pallas_call(
        functools.partial(_agg_ui_kernel, negative_slope=NEG_SLOPE),
        out_shape=jax.ShapeDtypeStruct((e, nd, h), jnp.bfloat16),
        grid_spec=pltpu.PrefetchScalarGridSpec(
            num_scalar_prefetch=0,
            grid=grid,
            in_specs=[pl.BlockSpec((1, tm, tk), lambda ei, i, k: (ei, i, k)),
                      pl.BlockSpec((tk, h), lambda ei, i, k: (k, ei))],
            out_specs=pl.BlockSpec((1, tm, h), lambda ei, i, k: (ei, i, 0)),
            scratch_shapes=[pltpu.VMEM((tm, h), jnp.float32)]),
        compiler_params=pltpu.CompilerParams(
            dimension_semantics=("parallel", "parallel", "arbitrary"),
            vmem_limit_bytes=VMEM_LIMIT_BYTES),
    )(a_stack, wh_t)


# ----------------------------------------------------------------------------
# Model: parameter setup + graph packing in plain JAX (padded, bf16 layouts)
# ----------------------------------------------------------------------------
def init_params(key, ntype_dict, in_size, hidden_size, out_size, n_layers,
                embedding_size):
    # The PyTorch module feeds (num_nodes, in_size) embeddings through
    # Linear(embedding_size, hidden); that only works when they agree.
    assert in_size == embedding_size, "module requires in_size == embedding_size"
    nu, ni = ntype_dict["user"], ntype_dict["item"]
    f0 = _round_up(embedding_size, LANE)
    f_hid = _round_up(hidden_size, LANE)
    f_out = _round_up(out_size, LANE)
    n_ui = _round_up(max(nu, ni), LANE)   # user & item share one padded row count

    def xavier(k, rows, cols):
        bound = (6.0 / (rows + cols)) ** 0.5
        return jax.random.uniform(k, (rows, cols), jnp.float32, -bound, bound)

    def linear(k, fi, fo):
        kw, kb = jax.random.split(k)
        bound = 1.0 / (fi ** 0.5)
        w = jax.random.uniform(kw, (fi, fo), jnp.float32, -bound, bound)
        b = jax.random.uniform(kb, (1, fo), jnp.float32, -bound, bound)
        return w, b

    params = {}
    # Learned embeddings for non-target node types, stacked [user, item] and
    # stored bf16 (they are bf16 MXU operands anyway -- halves HBM reads).
    key, ku, ki = jax.random.split(key, 3)
    emb_u = _pad2d(xavier(ku, nu, in_size), n_ui, f0)
    emb_i = _pad2d(xavier(ki, ni, in_size), n_ui, f0)
    params["embed_ui"] = jnp.stack([emb_u, emb_i]).astype(jnp.bfloat16)

    params["layers"] = []
    sizes = [(embedding_size, f0, hidden_size, f_hid)] + \
            [(hidden_size, f_hid, hidden_size, f_hid)] * (n_layers - 1)
    for (fi, fi_p, fo, fo_p) in sizes:
        key, k1, k2, k3, k4 = jax.random.split(key, 5)
        w_fol, b_fol = linear(k1, fi, fo)   # 'follows'      user   -> target
        w_rfl, b_rfl = linear(k2, fi, fo)   # 'rev_follows'  target -> user
        w_buy, b_buy = linear(k3, fi, fo)   # 'buys'         target -> item
        w_rby, b_rby = linear(k4, fi, fo)   # 'rev_buys'     item   -> target
        params["layers"].append({
            # messages INTO target, stacked per source type [user, item]
            "w_ui": jnp.stack([_pad2d(w_fol, fi_p, fo_p),
                               _pad2d(w_rby, fi_p, fo_p)]).astype(jnp.bfloat16),
            "b_ui": jnp.stack([_pad2d(b_fol, 1, fo_p),
                               _pad2d(b_rby, 1, fo_p)]),
            # messages FROM target: both weights concatenated along N so one
            # X read / one 256-wide MXU pass serves both edge types
            "w_t": jnp.concatenate([_pad2d(w_rfl, fi_p, fo_p),
                                    _pad2d(w_buy, fi_p, fo_p)],
                                   axis=1).astype(jnp.bfloat16),
            "b_t": jnp.concatenate([_pad2d(b_rfl, 1, fo_p),
                                    _pad2d(b_buy, 1, fo_p)], axis=1),
        })

    key, kc = jax.random.split(key)
    wc, bc = linear(kc, hidden_size, out_size)
    params["clf_w"] = _pad2d(wc, f_hid, f_out).astype(jnp.bfloat16)   # bf16 operand
    params["clf_b"] = _pad2d(bc, 1, f_out)                            # f32 bias
    return params


def make_graph(key, ntype_dict):
    """Dense row-normalized adjacencies, packed once for the fused kernels.

    A[dst, src] = 1/in_degree(dst) per edge, so A @ X is DGL's `mean`
    aggregation (zero rows for isolated destinations).  Adjacency is fixed
    across layers, so the per-destination concatenation / stacking is done
    ONCE here, never per layer.

    # TODO(synk): for realistic sparse graphs replace the dense padded
    # adjacency with a block-sparse layout: a scalar-prefetched list of
    # nonzero 128-wide K blocks per destination-row tile driving the A / Wh
    # index_maps, so all-zero blocks are skipped entirely.
    """
    nt, nu, ni = ntype_dict["target"], ntype_dict["user"], ntype_dict["item"]
    nt_p = _round_up(nt, LANE)
    n_ui = _round_up(max(nu, ni), LANE)

    def adj(k, nd, ns, nd_p, ns_p):
        a = jax.random.bernoulli(k, 0.4, (nd, ns)).astype(jnp.float32)
        deg = a.sum(axis=1, keepdims=True)
        a = jnp.where(deg > 0, a / jnp.maximum(deg, 1.0), 0.0)
        return _pad2d(a, nd_p, ns_p)

    key, k1, k2, k3, k4 = jax.random.split(key, 5)
    a_follows = adj(k1, nt, nu, nt_p, n_ui)        # target <- user
    a_rev_buys = adj(k2, nt, ni, nt_p, n_ui)       # target <- item
    a_rev_follows = adj(k3, nu, nt, n_ui, nt_p)    # user   <- target
    a_buys = adj(k4, ni, nt, n_ui, nt_p)           # item   <- target
    # NOTE: bf16 adjacency loses ~3 decimal digits on 1/deg -- fine at the
    # test tolerance; keep f32 if degrees get very large.
    return {
        "a_t": jnp.concatenate([a_follows, a_rev_buys], axis=1).astype(jnp.bfloat16),
        "a_ui": jnp.stack([a_rev_follows, a_buys]).astype(jnp.bfloat16),
    }


def hetero_rgcn_forward(graph, params, features, *, num_target, out_size):
    f0 = params["embed_ui"].shape[2]
    nt_p = graph["a_t"].shape[0]
    h_t = _pad2d(features, nt_p, f0).astype(jnp.bfloat16)   # layer-0 target feats
    h_ui = params["embed_ui"]                                # (2, n_ui, f0) bf16
    n_layers = len(params["layers"])
    logits = None
    for li, layer in enumerate(params["layers"]):
        last = li == n_layers - 1
        # Messages INTO 'target' from {user, item}: one stacked transform that
        # writes the concatenated-K Wh slab directly (no per-layer concat).
        wh_into_t = linear_stacked_apply(h_ui, layer["w_ui"], layer["b_ui"])
        if last:
            # Only the 'target' output feeds the classifier: skip user/item
            # work and fuse the classifier into the aggregation epilogue.
            logits = agg_target(graph["a_t"], wh_into_t,
                                clf=(params["clf_w"], params["clf_b"]))
        else:
            # Messages FROM 'target': one wide-N (2H) transform serves both
            # 'rev_follows' and 'buys' from a single X read.
            wh_from_t = linear_apply(h_t, layer["w_t"], layer["b_t"])
            h_t = agg_target(graph["a_t"], wh_into_t)   # leaky_relu+bf16 fused
            h_ui = agg_ui(graph["a_ui"], wh_from_t)     # leaky_relu+bf16 fused
    return logits[:num_target, :out_size]


# Pure-JAX reference mirroring the kernels' exact cast points (bf16 operands,
# f32 accumulation, bf16 intermediate hidden states) on the same padded data.
def hetero_rgcn_reference(graph, params, features, *, num_target, out_size):
    n_ui = params["embed_ui"].shape[1]
    f0 = params["embed_ui"].shape[2]
    nt_p = graph["a_t"].shape[0]
    lrelu = lambda x: jnp.where(x > 0, x, NEG_SLOPE * x)
    h_t = _pad2d(features, nt_p, f0).astype(jnp.bfloat16)
    h_u = params["embed_ui"][0]
    h_i = params["embed_ui"][1]
    a_fu = graph["a_t"][:, :n_ui]      # target <- user
    a_fi = graph["a_t"][:, n_ui:]      # target <- item
    a_u = graph["a_ui"][0]             # user   <- target
    a_i = graph["a_ui"][1]             # item   <- target
    n_layers = len(params["layers"])
    for li, layer in enumerate(params["layers"]):
        last = li == n_layers - 1
        hdim = layer["w_ui"].shape[2]
        wh_u = (jnp.dot(h_u, layer["w_ui"][0], preferred_element_type=jnp.float32)
                + layer["b_ui"][0]).astype(jnp.bfloat16)
        wh_i = (jnp.dot(h_i, layer["w_ui"][1], preferred_element_type=jnp.float32)
                + layer["b_ui"][1]).astype(jnp.bfloat16)
        t_acc = (jnp.dot(a_fu, wh_u, preferred_element_type=jnp.float32)
                 + jnp.dot(a_fi, wh_i, preferred_element_type=jnp.float32))
        if last:
            logits = (jnp.dot(t_acc.astype(jnp.bfloat16), params["clf_w"],
                              preferred_element_type=jnp.float32)
                      + params["clf_b"])
            return logits[:num_target, :out_size]
        wh_t = (jnp.dot(h_t, layer["w_t"], preferred_element_type=jnp.float32)
                + layer["b_t"]).astype(jnp.bfloat16)
        u_acc = jnp.dot(a_u, wh_t[:, :hdim], preferred_element_type=jnp.float32)
        i_acc = jnp.dot(a_i, wh_t[:, hdim:], preferred_element_type=jnp.float32)
        h_t = lrelu(t_acc).astype(jnp.bfloat16)
        h_u = lrelu(u_acc).astype(jnp.bfloat16)
        h_i = lrelu(i_acc).astype(jnp.bfloat16)


if __name__ == "__main__":
    key = jax.random.PRNGKey(0)
    ntype_dict = {"target": 16, "user": 24, "item": 12}
    in_size = embedding_size = 32
    hidden_size = 32
    out_size = 4
    n_layers = 2

    key, kp, kg, kf = jax.random.split(key, 4)
    params = init_params(kp, ntype_dict, in_size, hidden_size, out_size,
                         n_layers, embedding_size)
    graph = make_graph(kg, ntype_dict)
    features = jax.random.normal(kf, (ntype_dict["target"], in_size), jnp.float32)

    logits = hetero_rgcn_forward(graph, params, features,
                                 num_target=ntype_dict["target"],
                                 out_size=out_size)
    logits = jax.block_until_ready(logits)

    ref = hetero_rgcn_reference(graph, params, features,
                                num_target=ntype_dict["target"],
                                out_size=out_size)
    ref = jax.block_until_ready(ref)

    assert logits.shape == (ntype_dict["target"], out_size)
    # Both paths share the same bf16 rounding points; residual differences are
    # f32-accumulation-order level.
    assert jnp.allclose(logits, ref, atol=5e-3, rtol=5e-3), \
        "mismatch vs JAX reference"

    print("KERNEL_OK")
</pallas_src>

<mosaic_0001>
module attributes {stable_mosaic.version = 11 : i64} {
  func.func @_linear_stacked_kernel(%arg0: i32, %arg1: i32, %arg2: memref<1x128x128xbf16, #tpu.memory_space<vmem>>, %arg3: memref<1x128x128xbf16, #tpu.memory_space<vmem>>, %arg4: memref<1x1x128xf32, #tpu.memory_space<vmem>>, %arg5: memref<128x128xbf16, #tpu.memory_space<vmem>>) attributes {dimension_semantics = [#tpu.dimension_semantics<parallel>, #tpu.dimension_semantics<parallel>], iteration_bounds = array<i64: 2, 1>, scalar_prefetch = 0 : i64, scratch_operands = 0 : i64, tpu.core_type = #tpu.core_type<tc>, window_params = [{transform_indices = @transform_0, window_bounds = array<i64: 1, 128, 128>}, {transform_indices = @transform_1, window_bounds = array<i64: 1, 128, 128>}, {transform_indices = @transform_2, window_bounds = array<i64: 1, 1, 128>}, {transform_indices = @transform_3, window_bounds = array<i64: 128, 128>}]} {
    %c0 = arith.constant 0 : index
    %c0_0 = arith.constant 0 : index
    %c0_1 = arith.constant 0 : index
    %0 = vector.load %arg2[%c0, %c0_0, %c0_1] : memref<1x128x128xbf16, #tpu.memory_space<vmem>>, vector<1x128x128xbf16>
    %1 = vector.shape_cast %0 : vector<1x128x128xbf16> to vector<128x128xbf16>
    %c0_2 = arith.constant 0 : index
    %c0_3 = arith.constant 0 : index
    %c0_4 = arith.constant 0 : index
    %2 = vector.load %arg3[%c0_2, %c0_3, %c0_4] : memref<1x128x128xbf16, #tpu.memory_space<vmem>>, vector<1x128x128xbf16>
    %3 = vector.shape_cast %2 : vector<1x128x128xbf16> to vector<128x128xbf16>
    %cst = arith.constant dense<0.000000e+00> : vector<128x128xf32>
    %4 = tpu.matmul %1, %3, %cst {dimension_numbers = #tpu.dot_dimension_numbers<[1], [0], [0], [1], [0, 0, 1, 1], [], []>} : vector<128x128xbf16>, vector<128x128xbf16>, vector<128x128xf32> -> vector<128x128xf32>
    %c0_5 = arith.constant 0 : index
    %c0_6 = arith.constant 0 : index
    %c0_7 = arith.constant 0 : index
    %5 = vector.load %arg4[%c0_5, %c0_6, %c0_7] : memref<1x1x128xf32, #tpu.memory_space<vmem>>, vector<1x1x128xf32>
    %6 = vector.shape_cast %5 : vector<1x1x128xf32> to vector<1x128xf32>
    %7 = vector.broadcast %6 : vector<1x128xf32> to vector<128x128xf32>
    %8 = arith.addf %4, %7 : vector<128x128xf32>
    %9 = arith.truncf %8 : vector<128x128xf32> to vector<128x128xbf16>
    %c0_8 = arith.constant 0 : index
    %c0_9 = arith.constant 0 : index
    %10 = vector.load %arg5[%c0_8, %c0_9] : memref<128x128xbf16, #tpu.memory_space<vmem>>, vector<128x128xbf16>
    tpu.vector_store %arg5[%c0_8, %c0_9], %9 {strides = array<i32>} : memref<128x128xbf16, #tpu.memory_space<vmem>>, vector<128x128xbf16>,
    return
  }
  func.func @transform_0(%arg0: i32, %arg1: i32) -> (i32, i32, i32) {
    %c0_i32 = arith.constant 0 : i32
    %c0_i32_0 = arith.constant 0 : i32
    return %arg0, %arg1, %c0_i32 : i32, i32, i32
  }
  func.func @transform_1(%arg0: i32, %arg1: i32) -> (i32, i32, i32) {
    %c0_i32 = arith.constant 0 : i32
    %c0_i32_0 = arith.constant 0 : i32
    %c0_i32_1 = arith.constant 0 : i32
    return %arg0, %c0_i32, %c0_i32_0 : i32, i32, i32
  }
  func.func @transform_2(%arg0: i32, %arg1: i32) -> (i32, i32, i32) {
    %c0_i32 = arith.constant 0 : i32
    %c0_i32_0 = arith.constant 0 : i32
    %c0_i32_1 = arith.constant 0 : i32
    return %arg0, %c0_i32, %c0_i32_0 : i32, i32, i32
  }
  func.func @transform_3(%arg0: i32, %arg1: i32) -> (i32, i32) {
    %c1_i32 = arith.constant 1 : i32
    %0 = arith.muli %arg0, %c1_i32 : i32
    %1 = arith.addi %0, %arg1 : i32
    %c0_i32 = arith.constant 0 : i32
    %c0_i32_0 = arith.constant 0 : i32
    return %1, %c0_i32 : i32, i32
  }
}

</mosaic_0001>

<bundles_post_ra>
// kernel: tpu_custom_call.1
= control target key start
LH: loop header
LB: loop body
LE: loop exit
PB: predicated region body
PF: predicated region fallthrough
CT: control target
= control target key end

     0   :  { %8 = vsyncpa [#allocation3], 0  ;;  %s1430_s0 = inlined_call_operand.hbm [shape: bf16[2,128,128], index: 0, kind: input, shape index: {}]   ;;  %s1431_s1 = inlined_call_operand.hbm [shape: bf16[2,128,128], index: 1, kind: input, shape index: {}]   ;;  %s1432_s2 = inlined_call_operand.vmem [shape: f32[2,1,128], index: 2, kind: input, shape index: {}]   ;;  %s1433_s3 = inlined_call_operand.hbm [shape: bf16[256,128], index: 3, kind: output, shape index: {}]  }
   0x1   :  { %10 = vsyncpa [#allocation3 + $0x1], 0 }
   0x2   :  { %11 = vsyncpa [#allocation6], 0 }
   0x3   :  { %13 = vsyncpa [#allocation6 + $0x1], 0 }
   0x4   :  { %14 = vsyncpa [#allocation4], 0 }
   0x5   :  { %16 = vsyncpa [#allocation4 + $0x1], 0  ;;  %s1153_s12 = smov 0   ;;  %s1155_s13 = smov 0  }
   0x6   :  { %s1157_s14 = smov 0   ;;  %s1159_s15 = smov 0  }
   0x7   :  { %s1161_s16 = smov 0   ;;  %s1163_s17 = smov 0  }
   0x8 LB: > { %s709_s18 = sadd.s32 4294967295, %s1124_s17   ;;  %s710_s19 = sadd.s32 4294967294, %s1124_s17   ;;  %s1124_s17 = sphi %s1163_s17, %s22_s17   ;;  %s1120_s16 = sphi %s1161_s16, %s1451_s16   ;;  %s1116_s15 = sphi %s1159_s15, %s1450_s15   ;;  %s1112_s14 = sphi %s1157_s14, %s1449_s14   ;;  %s1108_s13 = sphi %s1155_s13, %s1448_s13   ;;  %s1104_s12 = sphi %s1153_s12, %s1447_s12  }
   0x9   : > { %s34_s20 = sadd.s32 1, %s1120_s16  ;;  %s43_s21 = sadd.s32 1, %s1112_s14 }
   0xa   : > { %p36_p0 = scmp.ge.s32.totalorder %s34_s20, 2  ;;  %p50_p1 = scmp.ne.s32.totalorder %s1112_s14, %s1108_s13 }
   0xb   : > { %p51_p2 = scmp.eq.s32.totalorder %s1124_s17, 0  ;;  %p56_p3 = scmp.ne.s32.totalorder %s1108_s13, %s1104_s12 }
   0xc   : > { %s1453_s20 = smov (%p36_p0, %s34_s20), 0  ;;  %p57_p5 = scmp.eq.s32.totalorder %s709_s18, 0 }
   0xd   : > { %p1194_p4 = por %p51_p2, %p50_p1  ;;  %s38_s23 = ssub.s32 %s1120_s16, %s1453_s20 }
   0xe   : > { %p134_p6 = scmp.eq.s32.totalorder %s709_s18, 1  ;;  %p41_p7 = scmp.eq.s32.totalorder %s38_s23, 0 }
   0xf   : > { %p1200_p8 = por %p57_p5, %p56_p3  ;;  %p140_p10 = scmp.eq.s32.totalorder %s710_s19, 1 }
  0x10   : > { %p1204_p9 = por %p134_p6, %p50_p1  ;;  %p908_p13 = scmp.lt.s32.totalorder %s1124_s17, 2 }
  0x11   : > { %s1437_s24 = scalar_select %p1200_p8, 1, 0 }
  0x12   : > { %s1438_s25 = scalar_select %p1204_p9, 1, 0 }
  0x13   : > { %s1209_s26 = scalar_select %p41_p7, %s1112_s14, %s43_s21  }
  0x14   : > { %p1211_p11 = por %p140_p10, %p56_p3  ;;  %s1218_s28 = sand.u32 1, %s1112_s14  }
  0x15   : > { %s713_s29 = sshll.u32 %s1218_s28, 6  ;;  %s761_s30 = sshll.u32 %s1120_s16, 10 }
  0x16   : > { %s1439_s27 = scalar_select %p1211_p11, 1, 0 }
  0x17   : > { %s1227_s6 = scalar_lea.hbm %s1430_s0, %s761_s30  ;;  %s164_s7 = scalar_lea.vmem [#allocation2], %s713_s29 }
  0x18   : > { %s173_s8 = sshll.u32 %s164_s7, 4  ;;  %p1235_p0 = pnand %p908_p13, %p1194_p4  ;;  %s1231_s8 = int_to_ptr.vmem [resolvable:$true] %s173_s8 }
  0x19   : > { %s161_s10 = scalar_lea.sflag [#allocation3], %s1218_s28  ;;  %s978_s11 = scalar_lea.hbm %s1227_s6, 1024 }
  0x1a   : > { %p979_p2 = scmp.ne.s32.totalorder %s1227_s6, %s978_s11  ;;  %p980_p3 = pneg %p1235_p0 }
  0x1b   : > { %s983_s21 = scalar_lea.hbm %s1430_s0, 2048  ;;  %p984_p4 = scmp.lt.u32.totalorder %s1227_s6, %s1430_s0 }
  0x1c   : > { %p981_p5 = pnand %p980_p3, %p979_p2  ;;  %p985_p7 = scmp.lt.u32.totalorder %s983_s21, %s978_s11 }
  0x1d   : > { %p987_p13 = scmp.lt.u32.totalorder %s978_s11, %s1227_s6 }
  0x1e   : > { %p982_p6 = pneg %p981_p5  ;;  %p986_p10 = por %p985_p7, %p984_p4 }
  0x20   : > { %p988_p12 = por %p987_p13, %p986_p10 }
  0x22   : > { %p989_p1 = pnand %p988_p12, %p982_p6 }
  0x24   : > { %992 = shalt.err (!%p989_p1)
}
  0x25   : > { %s993_s4 = scalar_lea.vmem %s1231_s8, 1024  ;;  %s1126_s5 = smov [#allocation2]  }
  0x26   : > { %p994_p2 = scmp.ne.s32.totalorder %s1231_s8, %s993_s4  ;;  %s998_s7 = sshll.u32 %s1126_s5, 4  ;;  %s999_s7 = int_to_ptr.vmem [resolvable:$false] %s998_s7 }
  0x27   : > { %s1000_s18 = scalar_lea.vmem %s999_s7, 2048  ;;  %p1001_p9 = scmp.lt.s32.totalorder %s1231_s8, %s999_s7 }
  0x28   : > { %p996_p5 = pnand %p994_p2, %p980_p3  ;;  %p1002_p4 = scmp.lt.s32.totalorder %s1000_s18, %s993_s4 }
  0x2a   : > { %p997_p11 = pneg %p996_p5  ;;  %p1003_p7 = por %p1002_p4, %p1001_p9 }
  0x2c   : > { %p1004_p10 = pnand %p1003_p7, %p997_p11 }
  0x2e   : > { %1007 = shalt.err (!%p1004_p10)
}
  0x2f   : > { %s1127_s11 = smov 64   ;;  %s1128_s19 = smov 4  }
  0x30   : > { %900 = dma.hbm_to_vmem [thread:$0]  (!%p1235_p0), %s1227_s6, 1024, %s1231_s8, %s161_s10, %s1127_s11, %s1127_s11, %s1128_s19  }
  0x31   : > { %p208_p9 = scmp.lt.s32.totalorder %s1124_s17, 3  ;;  %s1277_s23 = scalar_lea.hbm %s1431_s1, %s761_s30 }
  0x32   : > { %p1441_p11 = scmp.ge.s32.totalorder %s1124_s17, 1  ;;  %s187_s5 = scalar_lea.vmem [#allocation5], %s713_s29 }
  0x33   : > { %s194_s7 = sshll.u32 %s187_s5, 4  ;;  %s184_s6 = scalar_lea.sflag [#allocation6], %s1218_s28  ;;  %s1287_s7 = int_to_ptr.vmem [resolvable:$true] %s194_s7 }
  0x34   : > { %p1281_p12 = pnand %p1441_p11, %p208_p9  ;;  %s1008_s8 = scalar_lea.hbm %s1277_s23, 1024 }
  0x35   : > { %p1009_p1 = scmp.ne.s32.totalorder %s1277_s23, %s1008_s8  ;;  %s1013_s18 = scalar_lea.hbm %s1431_s1, 2048 }
  0x36   : > { %p1014_p2 = scmp.lt.u32.totalorder %s1277_s23, %s1431_s1  ;;  %p1015_p5 = scmp.lt.u32.totalorder %s1013_s18, %s1008_s8 }
  0x37   : > { %p1011_p6 = pnand %p1009_p1, %p980_p3  ;;  %p1017_p7 = scmp.lt.u32.totalorder %s1008_s8, %s1277_s23 }
  0x38   : > { %p1016_p4 = por %p1015_p5, %p1014_p2 }
  0x39   : > { %p1012_p13 = pneg %p1011_p6 }
  0x3a   : > { %p1018_p10 = por %p1017_p7, %p1016_p4 }
  0x3c   : > { %p1019_p9 = pnand %p1018_p10, %p1012_p13 }
  0x3e   : > { %1022 = shalt.err (!%p1019_p9)
}
  0x3f   : > { %s1023_s29 = scalar_lea.vmem %s1287_s7, 1024  ;;  %s1129_s5 = smov [#allocation5]  }
  0x40   : > { %p1024_p11 = scmp.ne.s32.totalorder %s1287_s7, %s1023_s29  ;;  %s1028_s30 = sshll.u32 %s1129_s5, 4  ;;  %s1029_s30 = int_to_ptr.vmem [resolvable:$false] %s1028_s30 }
  0x41   : > { %s1030_s10 = scalar_lea.vmem %s1029_s30, 2048  ;;  %p1031_p8 = scmp.lt.s32.totalorder %s1287_s7, %s1029_s30 }
  0x42   : > { %p1026_p1 = pnand %p1024_p11, %p980_p3  ;;  %p1032_p2 = scmp.lt.s32.totalorder %s1030_s10, %s1023_s29 }
  0x44   : > { %p1027_p6 = pneg %p1026_p1  ;;  %p1033_p5 = por %p1032_p2, %p1031_p8 }
  0x46   : > { %p1034_p4 = pnand %p1033_p5, %p1027_p6 }
  0x48   : > { %1037 = shalt.err (!%p1034_p4)
}
  0x49   : > { %903 = dma.hbm_to_vmem [thread:$0]  (!%p1235_p0), %s1277_s23, 1024, %s1287_s7, %s184_s6, %s1127_s11, %s1127_s11, %s1128_s19  }
  0x4a   : > { %212 = sbr.rel (%p1281_p12) target bundleno = 359 (0x167), region = 32  ;;  %s1321_s8 = sand.u32 (!%p1281_p12), 1, %s1108_s13  }
  0x4b   : > { %s1324_s18 = sshll.u32 (!%p1281_p12), %s1321_s8, 6  ;;  %s215_s9 = scalar_lea.sflag (!%p1281_p12), [#allocation3], %s1321_s8 }
  0x4c   : > { %s1328_s21 = scalar_lea.vmem (!%p1281_p12), [#allocation2], %s1324_s18  ;;  %p1443_p8 = scmp.ne.s32.totalorder (!%p1281_p12), %s1437_s24, 0 }
  0x51   : > { %1091 = dma.done.wait (%p1443_p8), %s215_s9, 1024  }
  0x52   : > { %1093 = vsyncadd (%p1443_p8), %s215_s9, 4294966272  ;;  %s224_s28 = scalar_lea.sflag [#allocation6], %s1321_s8  ;;  %s1336_s11 = scalar_lea.vmem [#allocation5], %s1324_s18 }
  0x53   : > { %1095 = dma.done.wait (%p1443_p8), %s224_s28, 1024  }
  0x54   : > { %1097 = vsyncadd (%p1443_p8), %s224_s28, 4294966272  ;;  %v962_v0 = vld [vmem:[%s1336_s11] sm:$0xff]   ;;  %v963_v1 = vld [vmem:[%s1336_s11 + $0x8] sm:$0xff]   ;;  %p259_p0 = scmp.lt.s32.totalorder %s1116_s15, 1  ;;  %s1364_s7 = scalar_lea.vmem [#allocation7], %s1324_s18 }
  0x55   : > { %843 = vmatprep.subr.bf16.mxu0 %v962_v0  ;;  %875 = vmatprep.subr.bf16.mxu1 %v962_v0  ;;  %v964_v2 = vld [vmem:[%s1336_s11 + $0x10] sm:$0xff]   ;;  %v965_v3 = vld [vmem:[%s1336_s11 + $0x18] sm:$0xff]   ;;  %v970_v4 = vld [vmem:[%s1328_s21] sm:$0xff]   ;;  %s592_s6 = sshll.u32 %s1364_s7, 4  ;;  %s779_s22 = sshll.u32 %s1116_s15, 10  ;;  %s1372_s6 = int_to_ptr.vmem [resolvable:$true] %s592_s6 }
  0x56   : > { %844 = vmatpush3.bf16.msra.mxu0 %v962_v0  ;;  %883 = vmatpush3.bf16.msra.mxu1 %v962_v0  ;;  %v971_v5 = vld [vmem:[%s1328_s21 + $0x20] sm:$0xff]   ;;  %v967_v7 = vld [vmem:[%s1336_s11 + $0x28] sm:$0xff]   ;;  %v968_v8 = vld [vmem:[%s1336_s11 + $0x30] sm:$0xff]   ;;  %s260_s24 = scalar_select %p259_p0, %s1116_s15, 1 }
  0x57   : > { %845 = vmatprep.subr.bf16.mxu0 %v963_v1  ;;  %876 = vmatprep.subr.bf16.mxu1 %v963_v1  ;;  %v966_v6 = vld [vmem:[%s1336_s11 + $0x20] sm:$0xff]   ;;  %v969_v9 = vld [vmem:[%s1336_s11 + $0x38] sm:$0xff]   ;;  %v972_v10 = vld [vmem:[%s1328_s21 + $0x8] sm:$0xff]   ;;  %s1377_s5 = scalar_lea.hbm %s1433_s3, %s779_s22  ;;  %s578_s30 = scalar_lea.sflag [#allocation4], %s1321_s8 }
  0x58   : > { %859 = vmatprep.mubr.bf16.mxu0 %v970_v4  ;;  %867 = vmatprep.mubr.bf16.mxu1 %v971_v5  ;;  %v973_v11 = vld [vmem:[%s1328_s21 + $0x28] sm:$0xff]   ;;  %v974_v12 = vld [vmem:[%s1328_s21 + $0x10] sm:$0xff]   ;;  %v976_v14 = vld [vmem:[%s1328_s21 + $0x18] sm:$0xff]   ;;  %s261_s4 = scalar_lea.vmem %s1432_s2, %s260_s24  ;;  %s1038_s10 = scalar_lea.vmem %s1372_s6, 1024 }
  0x59   : > { %v975_v13 = vld [vmem:[%s1328_s21 + $0x30] sm:$0xff]   ;;  %v977_v15 = vld [vmem:[%s1328_s21 + $0x38] sm:$0xff]   ;;  %v723_v17 = vld [vmem:[%s261_s4] ss:$0 sm:$0xff]  ;;  %p1039_p3 = scmp.ne.s32.totalorder %s1372_s6, %s1038_s10  ;;  %p1444_p12 = scmp.ne.s32.totalorder %s1438_s25, 0 }
  0x5a   : > { %846 = vmatpush3.bf16.msra.mxu0 %v963_v1  ;;  %884 = vmatpush3.bf16.msra.mxu1 %v963_v1  ;;  %s1130_s18 = smov [#allocation7]  }
  0x5b   : > { %847 = vmatprep.subr.bf16.mxu0 %v964_v2  ;;  %877 = vmatprep.subr.bf16.mxu1 %v964_v2  ;;  %p1040_p13 = pnand %p1039_p3, %p1444_p12  ;;  %s1042_s9 = sshll.u32 %s1130_s18, 4  ;;  %s1043_s9 = int_to_ptr.vmem [resolvable:$false] %s1042_s9 }
  0x5c   : > { %s1044_s21 = scalar_lea.vmem %s1043_s9, 2048  ;;  %p1045_p10 = scmp.lt.s32.totalorder %s1372_s6, %s1043_s9 }
  0x5d   : > { %p1041_p7 = pneg %p1040_p13  ;;  %p1046_p9 = scmp.lt.s32.totalorder %s1044_s21, %s1038_s10 }
  0x5e   : > { %848 = vmatpush3.bf16.msra.mxu0 %v964_v2  ;;  %885 = vmatpush3.bf16.msra.mxu1 %v964_v2 }
  0x5f   : > { %849 = vmatprep.subr.bf16.mxu0 %v965_v3  ;;  %878 = vmatprep.subr.bf16.mxu1 %v965_v3  ;;  %p1047_p11 = por %p1046_p9, %p1045_p10 }
  0x61   : > { %p1048_p1 = pnand %p1047_p11, %p1041_p7 }
  0x62   : > { %850 = vmatpush3.bf16.msra.mxu0 %v965_v3  ;;  %886 = vmatpush3.bf16.msra.mxu1 %v965_v3 }
  0x63   : > { %851 = vmatprep.subr.bf16.mxu0 %v966_v6  ;;  %879 = vmatprep.subr.bf16.mxu1 %v966_v6 }
  0x66   : > { %852 = vmatpush3.bf16.msra.mxu0 %v966_v6  ;;  %887 = vmatpush3.bf16.msra.mxu1 %v966_v6 }
  0x67   : > { %853 = vmatprep.subr.bf16.mxu0 %v967_v7  ;;  %880 = vmatprep.subr.bf16.mxu1 %v967_v7 }
  0x6a   : > { %854 = vmatpush3.bf16.msra.mxu0 %v967_v7  ;;  %888 = vmatpush3.bf16.msra.mxu1 %v967_v7 }
  0x6b   : > { %855 = vmatprep.subr.bf16.mxu0 %v968_v8  ;;  %881 = vmatprep.subr.bf16.mxu1 %v968_v8 }
  0x6e   : > { %856 = vmatpush3.bf16.msra.mxu0 %v968_v8  ;;  %889 = vmatpush3.bf16.msra.mxu1 %v968_v8 }
  0x6f   : > { %857 = vmatprep.subr.bf16.mxu0 %v969_v9  ;;  %882 = vmatprep.subr.bf16.mxu1 %v969_v9 }
  0x72   : > { %858 = vmatpush3.bf16.msra.mxu0 %v969_v9  ;;  %890 = vmatpush3.bf16.msra.mxu1 %v969_v9 }
  0x75   : > { %860 = vmatmul.mubr.bf16.vlgmr.msra.gmra.mrb[0].mxu0 %v972_v10  ;;  %868 = vmatmul.mubr.bf16.vlgmr.msra.gmra.mrb[0].mxu1 %v973_v11 }
  0x76   : > { %863 = vmatprep.mubr.bf16.mxu0 %v974_v12  ;;  %871 = vmatprep.mubr.bf16.mxu1 %v975_v13 }
  0x7d   : > { %864 = vmatmul.mubr.bf16.gmra.mrb[4].mxu0 %v976_v14  ;;  %872 = vmatmul.mubr.bf16.gmra.mrb[4].mxu1 %v977_v15 }
 0x148   : > { %v861_v16 = vpop.f32.mrb[0].mxu0  ;;  %v869_v18 = vpop.f32.mrb[0].mxu1 }
 0x149   : > { %v434_v19 = vpop.f32.mrb[1].mxu0  ;;  %v466_v20 = vpop.f32.mrb[1].mxu1  ;;  %v443_v23 = vadd.f32 %v861_v16, %v723_v17  ;;  %v475_v24 = vadd.f32 %v869_v18, %v723_v17 }
 0x14a   : > { %v862_v21 = vpop.f32.mrb[2].mxu0  ;;  %v870_v22 = vpop.f32.mrb[2].mxu1  ;;  %v435_v29 = vadd.f32 %v723_v17, %v434_v19  ;;  %v467_v30 = vadd.f32 %v723_v17, %v466_v20 }
 0x14b   : > { %v446_v25 = vadd.f32 %v862_v21, %v723_v17  ;;  %v478_v26 = vadd.f32 %v870_v22, %v723_v17  ;;  %v437_v27 = vpop.f32.mrb[3].mxu0  ;;  %v469_v28 = vpop.f32.mrb[3].mxu1 }
 0x14c   : > { %v438_v31 = vadd.f32 %v723_v17, %v437_v27  ;;  %v470_v32 = vadd.f32 %v723_v17, %v469_v28 }
 0x14d   : > { %v788_v33 = vpack.c.bf16 %v446_v25, %v443_v23  ;;  %v808_v34 = vpack.c.bf16 %v478_v26, %v475_v24 }
 0x14e   : > { %v783_v35 = vpack.c.bf16 %v438_v31, %v435_v29  ;;  %v803_v36 = vpack.c.bf16 %v470_v32, %v467_v30 }
 0x14f   : > { %820 = vst [vmem:[%s1364_s7 + $0x8] sm:$0xff] %v788_v33   ;;  %824 = vst [vmem:[%s1364_s7 + $0x28] sm:$0xff] %v808_v34  }
 0x150   : > { %784 = vst [vmem:[%s1364_s7] sm:$0xff] %v783_v35   ;;  %823 = vst [vmem:[%s1364_s7 + $0x20] sm:$0xff] %v803_v36   ;;  %v865_v37 = vpop.f32.mrb[4].mxu0  ;;  %v873_v38 = vpop.f32.mrb[4].mxu1 }
 0x151   : > { %v450_v39 = vpop.f32.mrb[5].mxu0  ;;  %v482_v40 = vpop.f32.mrb[5].mxu1  ;;  %v459_v43 = vadd.f32 %v865_v37, %v723_v17  ;;  %v491_v44 = vadd.f32 %v873_v38, %v723_v17 }
 0x152   : > { %v866_v41 = vpop.f32.mrb[6].mxu0  ;;  %v874_v42 = vpop.f32.mrb[6].mxu1  ;;  %v451_v49 = vadd.f32 %v723_v17, %v450_v39  ;;  %v483_v50 = vadd.f32 %v723_v17, %v482_v40 }
 0x153   : > { %v462_v45 = vadd.f32 %v866_v41, %v723_v17  ;;  %v494_v46 = vadd.f32 %v874_v42, %v723_v17  ;;  %v453_v47 = vpop.f32.mrb[7].mxu0  ;;  %v485_v48 = vpop.f32.mrb[7].mxu1 }
 0x154   : > { %v454_v51 = vadd.f32 %v723_v17, %v453_v47  ;;  %v486_v52 = vadd.f32 %v723_v17, %v485_v48 }
 0x155   : > { %v798_v53 = vpack.c.bf16 %v462_v45, %v459_v43  ;;  %v818_v54 = vpack.c.bf16 %v494_v46, %v491_v44 }
 0x156   : > { %v793_v55 = vpack.c.bf16 %v454_v51, %v451_v49  ;;  %v813_v56 = vpack.c.bf16 %v486_v52, %v483_v50 }
 0x157   : > { %822 = vst [vmem:[%s1364_s7 + $0x18] sm:$0xff] %v798_v53   ;;  %826 = vst [vmem:[%s1364_s7 + $0x38] sm:$0xff] %v818_v54  }
 0x158   : > { %821 = vst [vmem:[%s1364_s7 + $0x10] sm:$0xff] %v793_v55   ;;  %825 = vst [vmem:[%s1364_s7 + $0x30] sm:$0xff] %v813_v56  }
 0x159   : > { %1051 = shalt.err (!%p1048_p1)
}
 0x15a   : > { %s1052_s28 = scalar_lea.hbm %s1377_s5, 1024  ;;  %s1056_s19 = scalar_lea.hbm %s1433_s3, 2048 }
 0x15b   : > { %p1053_p6 = scmp.ne.s32.totalorder %s1377_s5, %s1052_s28  ;;  %p1057_p4 = scmp.lt.u32.totalorder %s1377_s5, %s1433_s3 }
 0x15c   : > { %p1058_p8 = scmp.lt.u32.totalorder %s1056_s19, %s1052_s28  ;;  %p1060_p3 = scmp.lt.u32.totalorder %s1052_s28, %s1377_s5 }
 0x15d   : > { %p1054_p2 = pnand %p1053_p6, %p1444_p12 }
 0x15e   : > { %p1059_p0 = por %p1058_p8, %p1057_p4 }
 0x15f   : > { %p1055_p5 = pneg %p1054_p2 }
 0x160   : > { %p1061_p13 = por %p1060_p3, %p1059_p0 }
 0x162   : > { %p1062_p7 = pnand %p1061_p13, %p1055_p5 }
 0x164   : > { %1065 = shalt.err (!%p1062_p7)
}
 0x165   : > { %s1131_s7 = smov 64   ;;  %s1132_s22 = smov 4  }
 0x166   : > { %895 = dma.vmem_to_hbm [thread:$0]  (%p1444_p12), %s1372_s6, 1024, %s1377_s5, %s578_s30, %s1131_s7, %s1131_s7, %s1132_s22  }
 0x167 PF: > { %s607_s15 = sand.u32 1, %s1104_s12   ;;  %p1445_p10 = scmp.ne.s32.totalorder %s1439_s27, 0 }
 0x168   : > { %p1446_p9 = scmp.ge.s32.totalorder %s1124_s17, 2  ;;  %s608_s29 = scalar_lea.sflag [#allocation4], %s607_s15 }
 0x16a   : > { %p905_p11 = pnand %p1446_p9, %p1445_p10 }
 0x16c   : > { %1099 = dma.done.wait (!%p905_p11), %s608_s29, 1024  }
 0x16d   : > { %1101 = vsyncadd (!%p905_p11), %s608_s29, 4294966272  ;;  %s22_s17 = sadd.s32 1, %s1124_s17   ;;  %s1447_s12 = smov %s1108_s13 }
 0x16e   : > { %p19_p1 = scmp.ge.s32.totalorder %s22_s17, 4   ;;  %s1448_s13 = smov %s1112_s14 }
 0x16f   : > { %s1449_s14 = smov %s1209_s26  ;;  %s1450_s15 = smov %s1120_s16 }
 0x170   : > { %s1451_s16 = smov %s1453_s20  ;;  %21 = sbr.rel (!%p19_p1) target bundleno = 8 (0x8), region = 93 }
 0x177   :  { %613 = vsyncpa [#allocation3], 1 }
 0x178   :  { %615 = vsyncpa [#allocation3 + $0x1], 1 }
 0x179   :  { %616 = vsyncpa [#allocation6], 1 }
 0x17a   :  { %618 = vsyncpa [#allocation6 + $0x1], 1 }
 0x17b   :  { %619 = vsyncpa [#allocation4], 1 }
 0x17c   :  { %621 = vsyncpa [#allocation4 + $0x1], 1 }

</bundles_post_ra>
